<compile_context>
chip_gen: v5e
topology: v5e:2x2
jax: 0.10.0
libtpu: 0.0.40
codegen_flags: <defaults>
</compile_context>

<pallas_src>
import jax
import jax.numpy as jnp
from jax import lax
from jax.experimental import pallas as pl
from jax.experimental.pallas import tpu as pltpu


def se_kernel(x_ref, w1_ref, w2_ref, onehot_ref, out_ref, gate_ref):
    # x_ref:      (nb, C, H*W)  native dtype
    # w1_ref:     (Hr, H)       fc1 weight (1x1 conv)
    # w2_ref:     (H, Hr)       fc2 weight (1x1 conv)
    # onehot_ref: (H, H*W)      f32, onehot[h, h*W + w] = 1 (host-built, resident)
    # out_ref:    (nb, C, H*W)  same dtype as x
    # gate_ref:   (nb, 1, H)    float32
    nb, C, HW = x_ref.shape
    Hr, H = w1_ref.shape
    W = HW // H

    onehot = onehot_ref[...]                                          # (H, HW) f32

    # ---- squeeze: mean over (C, W) for each (n, h) ------------------------
    # f32 accumulation; the W-reduction is a tiny MXU dot against the resident
    # one-hot (avoids in-kernel lane<->sublane reshapes of the big slab).
    s_cw = jnp.sum(x_ref[...], axis=1, dtype=jnp.float32)             # (nb, HW)
    s = lax.dot_general(s_cw, onehot, (((1,), (1,)), ((), ())),
                        preferred_element_type=jnp.float32)           # (nb, H)
    s = s * (1.0 / (C * W))

    # ---- excite: fc1 -> relu -> fc2 -> sigmoid (negligible compute) -------
    w1 = w1_ref[...].astype(jnp.float32)                              # (Hr, H)
    h = lax.dot_general(s, w1, (((1,), (1,)), ((), ())),
                        preferred_element_type=jnp.float32)           # (nb, Hr)
    h = jnp.maximum(h, 0.0)
    w2 = w2_ref[...].astype(jnp.float32)                              # (H, Hr)
    g = lax.dot_general(h, w2, (((1,), (1,)), ((), ())),
                        preferred_element_type=jnp.float32)           # (nb, H)
    g = jax.nn.sigmoid(g)

    gate_ref[...] = g[:, None, :]                                     # (nb, 1, H) f32

    # ---- gate: broadcast g back onto the lane-dense H*W axis --------------
    g_hw = lax.dot_general(g, onehot, (((1,), (0,)), ((), ())),
                           preferred_element_type=jnp.float32)        # (nb, HW)
    g_hw = g_hw.astype(out_ref.dtype)        # drop the f32 temporary right away
    out_ref[...] = x_ref[...] * g_hw[:, None, :]


def _vmem_capacity_bytes():
    """Physical per-core VMEM; conservative 64 MiB (v7x size) if query fails."""
    try:
        cap = getattr(pltpu.get_tpu_info(), "vmem_capacity_bytes", None)
        if cap:
            return int(cap)
    except Exception:
        pass
    return 64 * 1024 * 1024


def se_module2(x, w1, w2, *, block_n=None, vmem_limit_bytes=None):
    """x: (N, C, H, W); w1: (H//r, H); w2: (H, H//r).

    Returns (x * gate, gate) with gate shaped (N, 1, H, 1) in float32,
    mirroring the PyTorch module's forward.
    """
    N, C, H, W = x.shape
    HW = H * W
    Hr = w1.shape[0]
    itemsize = jnp.dtype(x.dtype).itemsize

    # ---- generation-aware VMEM budget -------------------------------------
    # v5e/v6e: 128 MiB per core -> ~100 MiB scoped limit (big blocks, long DMAs).
    # v7x:      64 MiB per core -> ~48 MiB scoped limit (headroom for scratch).
    if vmem_limit_bytes is None:
        cap = _vmem_capacity_bytes()
        vmem_limit_bytes = int(min(cap - 16 * 1024 * 1024, 100 * 1024 * 1024))

    # Resident bytes independent of block size (conservatively assume Pallas
    # double-buffers even constant-index blocks).
    fixed_bytes = 2 * H * HW * 4 + 2 * (Hr * H + H * Hr) * 4
    # Per-sample cost of one grid step: double-buffered x in + out blocks, the
    # f32 (nb, HW) squeeze/broadcast temporaries, and the tiny gate block.
    per_sample = (4 * C * HW * itemsize        # x in + out, double-buffered
                  + 2 * HW * 4                 # s_cw + g_hw (f32)
                  + HW * itemsize              # g_hw after the cast
                  + 2 * H * 4)                 # gate output block
    headroom = 8 * 1024 * 1024                 # Mosaic internal scratch / spill slack
    usable = vmem_limit_bytes - fixed_bytes - headroom

    if block_n is None:
        if per_sample > max(usable, 0):
            # TODO(synk): two-pass fallback (pass 1: squeeze over HW-chunks into an
            # (N, H) gate; pass 2: tiled gated multiply) for activations whose
            # single sample does not fit in VMEM.
            raise ValueError(
                "SEModule2 Pallas kernel: a single sample needs ~"
                f"{per_sample} bytes of VMEM but only ~{max(usable, 0)} are "
                f"available (vmem_limit_bytes={vmem_limit_bytes}).")
        block_n = max(1, min(N, usable // per_sample))
        # Keep a few grid steps: N is the only "parallel" axis (v7x megacore
        # sharding) and the only axis the double-buffer pipeline overlaps across.
        target_steps = min(N, 4)
        if target_steps > 1:
            block_n = max(1, min(block_n, pl.cdiv(N, target_steps)))
        # Best effort: prefer an even step count so two TensorCores split evenly.
        steps = pl.cdiv(N, block_n)
        if steps > 1 and steps % 2:
            block_n = max(1, pl.cdiv(N, steps + 1))

    # Ragged last block is fine: samples are fully independent along N and
    # out-of-bounds writes of the padded rows are dropped.
    grid = (pl.cdiv(N, block_n),)

    # Lane-dense view: fold (H, W) -> H*W (free, contiguous reshape of NCHW).
    x3 = x.reshape(N, C, HW)
    # Host-precomputed one-hot "unfold": onehot[h, h*W + w] = 1.
    onehot = jnp.repeat(jnp.eye(H, dtype=jnp.float32), W, axis=1)     # (H, HW)

    cost = pl.CostEstimate(
        flops=int(2 * N * C * HW + 2 * N * (HW * H + H * Hr + Hr * H + H * HW)),
        transcendentals=int(N * H),
        bytes_accessed=int(2 * N * C * HW * itemsize + H * HW * 4
                           + 2 * H * Hr * 4 + N * H * 4),
    )

    out3, gate = pl.pallas_call(
        se_kernel,
        out_shape=(
            jax.ShapeDtypeStruct((N, C, HW), x.dtype),
            jax.ShapeDtypeStruct((N, 1, H), jnp.float32),
        ),
        grid=grid,
        in_specs=[
            pl.BlockSpec((block_n, C, HW), lambda i: (i, 0, 0)),
            pl.BlockSpec((Hr, H), lambda i: (0, 0)),
            pl.BlockSpec((H, Hr), lambda i: (0, 0)),
            pl.BlockSpec((H, HW), lambda i: (0, 0)),     # resident one-hot
        ],
        out_specs=(
            pl.BlockSpec((block_n, C, HW), lambda i: (i, 0, 0)),
            pl.BlockSpec((block_n, 1, H), lambda i: (i, 0, 0)),
        ),
        compiler_params=pltpu.CompilerParams(
            dimension_semantics=("parallel",),
            vmem_limit_bytes=int(vmem_limit_bytes),
        ),
        cost_estimate=cost,
    )(x3, w1, w2, onehot)

    return out3.reshape(N, C, H, W), gate.reshape(N, 1, H, 1)


def se_module2_ref(x, w1, w2):
    # pure-JAX reference of the PyTorch forward
    s = jnp.mean(x.astype(jnp.float32), axis=(1, 3))            # (N, H)
    h = jnp.maximum(s @ w1.astype(jnp.float32).T, 0.0)          # (N, Hr)
    g = jax.nn.sigmoid(h @ w2.astype(jnp.float32).T)            # (N, H)
    g4 = g[:, None, :, None]                                    # (N, 1, H, 1)
    return x * g4.astype(x.dtype), g4


if __name__ == "__main__":
    # SEModule2(channels=16, reduction=4) on x of shape (2, 4, 16, 16).
    # (channels must equal H because of the transpose(1,2) in forward.)
    N, C, H, W = 2, 4, 16, 16
    channels, reduction = H, 4
    Hr = channels // reduction

    key = jax.random.PRNGKey(0)
    kx, k1, k2 = jax.random.split(key, 3)

    x = jax.random.normal(kx, (N, C, H, W), dtype=jnp.float32)

    # fc1: xavier_uniform_ on Conv2d(channels, channels//r, 1) weight (Hr, H, 1, 1)
    limit1 = (6.0 / (channels + Hr)) ** 0.5
    w1 = jax.random.uniform(k1, (Hr, channels), jnp.float32, -limit1, limit1)

    # fc2: PyTorch default conv init (kaiming_uniform a=sqrt(5)) -> bound 1/sqrt(fan_in)
    limit2 = 1.0 / (Hr ** 0.5)
    w2 = jax.random.uniform(k2, (channels, Hr), jnp.float32, -limit2, limit2)

    # The heuristic picks block_n=1 here (N=2 -> 2 grid steps), exercising the
    # real pipelined, "parallel" grid over N.
    out, gate = se_module2(x, w1, w2)
    jax.block_until_ready((out, gate))

    out_ref, gate_ref = se_module2_ref(x, w1, w2)
    assert out.shape == (N, C, H, W) and gate.shape == (N, 1, H, 1)
    assert jnp.allclose(out, out_ref, atol=1e-5, rtol=1e-5)
    assert jnp.allclose(gate, gate_ref, atol=1e-5, rtol=1e-5)

    print("KERNEL_OK")
</pallas_src>

<mosaic_0001>
module attributes {stable_mosaic.version = 11 : i64} {
  func.func @se_kernel(%arg0: i32, %arg1: memref<1x4x256xf32, #tpu.memory_space<vmem>>, %arg2: memref<4x16xf32, #tpu.memory_space<vmem>>, %arg3: memref<16x4xf32, #tpu.memory_space<vmem>>, %arg4: memref<16x256xf32, #tpu.memory_space<vmem>>, %arg5: memref<1x4x256xf32, #tpu.memory_space<vmem>>, %arg6: memref<1x1x16xf32, #tpu.memory_space<vmem>>) attributes {dimension_semantics = [#tpu.dimension_semantics<parallel>], iteration_bounds = array<i64: 2>, scalar_prefetch = 0 : i64, scratch_operands = 0 : i64, tpu.core_type = #tpu.core_type<tc>, window_params = [{transform_indices = @transform_0, window_bounds = array<i64: 1, 4, 256>}, {pipeline_mode = #tpu.pipeline_mode<synchronous>, transform_indices = @transform_1, window_bounds = array<i64: 4, 16>}, {pipeline_mode = #tpu.pipeline_mode<synchronous>, transform_indices = @transform_2, window_bounds = array<i64: 16, 4>}, {pipeline_mode = #tpu.pipeline_mode<synchronous>, transform_indices = @transform_3, window_bounds = array<i64: 16, 256>}, {transform_indices = @transform_4, window_bounds = array<i64: 1, 4, 256>}, {transform_indices = @transform_5, window_bounds = array<i64: 1, 1, 16>}]} {
    %c0 = arith.constant 0 : index
    %c0_0 = arith.constant 0 : index
    %0 = vector.load %arg4[%c0, %c0_0] : memref<16x256xf32, #tpu.memory_space<vmem>>, vector<16x256xf32>
    %c0_1 = arith.constant 0 : index
    %c0_2 = arith.constant 0 : index
    %c0_3 = arith.constant 0 : index
    %1 = vector.load %arg1[%c0_1, %c0_2, %c0_3] : memref<1x4x256xf32, #tpu.memory_space<vmem>>, vector<1x4x256xf32>
    %cst = arith.constant dense<0.000000e+00> : vector<1x256xf32>
    %2 = vector.multi_reduction <add>, %1, %cst [1] : vector<1x4x256xf32> to vector<1x256xf32>
    %cst_4 = arith.constant dense<0.000000e+00> : vector<1x16xf32>
    %3 = tpu.matmul %2, %0, %cst_4 {dimension_numbers = #tpu.dot_dimension_numbers<[1], [1], [0], [0], [0, 0, 1, 0], [], []>} : vector<1x256xf32>, vector<16x256xf32>, vector<1x16xf32> -> vector<1x16xf32>
    %cst_5 = arith.constant 1.562500e-02 : f32
    %4 = vector.broadcast %cst_5 : f32 to vector<1x16xf32>
    %5 = arith.mulf %3, %4 : vector<1x16xf32>
    %c0_6 = arith.constant 0 : index
    %c0_7 = arith.constant 0 : index
    %6 = vector.load %arg2[%c0_6, %c0_7] : memref<4x16xf32, #tpu.memory_space<vmem>>, vector<4x16xf32>
    %cst_8 = arith.constant dense<0.000000e+00> : vector<1x4xf32>
    %7 = tpu.matmul %5, %6, %cst_8 {dimension_numbers = #tpu.dot_dimension_numbers<[1], [1], [0], [0], [0, 0, 1, 0], [], []>} : vector<1x16xf32>, vector<4x16xf32>, vector<1x4xf32> -> vector<1x4xf32>
    %cst_9 = arith.constant 0.000000e+00 : f32
    %8 = vector.broadcast %cst_9 : f32 to vector<1x4xf32>
    %9 = arith.maximumf %7, %8 : vector<1x4xf32>
    %c0_10 = arith.constant 0 : index
    %c0_11 = arith.constant 0 : index
    %10 = vector.load %arg3[%c0_10, %c0_11] : memref<16x4xf32, #tpu.memory_space<vmem>>, vector<16x4xf32>
    %cst_12 = arith.constant dense<0.000000e+00> : vector<1x16xf32>
    %11 = tpu.matmul %9, %10, %cst_12 {dimension_numbers = #tpu.dot_dimension_numbers<[1], [1], [0], [0], [0, 0, 1, 0], [], []>} : vector<1x4xf32>, vector<16x4xf32>, vector<1x16xf32> -> vector<1x16xf32>
    %12 = arith.negf %11 : vector<1x16xf32>
    %13 = math.exp %12 : vector<1x16xf32>
    %cst_13 = arith.constant 1.000000e+00 : f32
    %14 = vector.broadcast %cst_13 : f32 to vector<1x16xf32>
    %15 = arith.addf %14, %13 : vector<1x16xf32>
    %16 = arith.divf %14, %15 : vector<1x16xf32>
    %17 = vector.shape_cast %16 : vector<1x16xf32> to vector<1x1x16xf32>
    %c0_14 = arith.constant 0 : index
    %c0_15 = arith.constant 0 : index
    %c0_16 = arith.constant 0 : index
    %18 = vector.load %arg6[%c0_14, %c0_15, %c0_16] : memref<1x1x16xf32, #tpu.memory_space<vmem>>, vector<1x1x16xf32>
    tpu.vector_store %arg6[%c0_14, %c0_15, %c0_16], %17 {strides = array<i32>} : memref<1x1x16xf32, #tpu.memory_space<vmem>>, vector<1x1x16xf32>,
    %cst_17 = arith.constant dense<0.000000e+00> : vector<1x256xf32>
    %19 = tpu.matmul %16, %0, %cst_17 {dimension_numbers = #tpu.dot_dimension_numbers<[1], [0], [0], [1], [0, 0, 1, 1], [], []>} : vector<1x16xf32>, vector<16x256xf32>, vector<1x256xf32> -> vector<1x256xf32>
    %c0_18 = arith.constant 0 : index
    %c0_19 = arith.constant 0 : index
    %c0_20 = arith.constant 0 : index
    %20 = vector.load %arg1[%c0_18, %c0_19, %c0_20] : memref<1x4x256xf32, #tpu.memory_space<vmem>>, vector<1x4x256xf32>
    %21 = vector.shape_cast %19 : vector<1x256xf32> to vector<1x1x256xf32>
    %22 = vector.broadcast %21 : vector<1x1x256xf32> to vector<1x4x256xf32>
    %23 = arith.mulf %20, %22 : vector<1x4x256xf32>
    %c0_21 = arith.constant 0 : index
    %c0_22 = arith.constant 0 : index
    %c0_23 = arith.constant 0 : index
    %24 = vector.load %arg5[%c0_21, %c0_22, %c0_23] : memref<1x4x256xf32, #tpu.memory_space<vmem>>, vector<1x4x256xf32>
    tpu.vector_store %arg5[%c0_21, %c0_22, %c0_23], %23 {strides = array<i32>} : memref<1x4x256xf32, #tpu.memory_space<vmem>>, vector<1x4x256xf32>,
    return
  }
  func.func @transform_0(%arg0: i32) -> (i32, i32, i32) {
    %c0_i32 = arith.constant 0 : i32
    %c0_i32_0 = arith.constant 0 : i32
    %c0_i32_1 = arith.constant 0 : i32
    return %arg0, %c0_i32, %c0_i32_0 : i32, i32, i32
  }
  func.func @transform_1(%arg0: i32) -> (i32, i32) {
    %c0_i32 = arith.constant 0 : i32
    %c0_i32_0 = arith.constant 0 : i32
    %c0_i32_1 = arith.constant 0 : i32
    return %c0_i32, %c0_i32_0 : i32, i32
  }
  func.func @transform_2(%arg0: i32) -> (i32, i32) {
    %c0_i32 = arith.constant 0 : i32
    %c0_i32_0 = arith.constant 0 : i32
    %c0_i32_1 = arith.constant 0 : i32
    return %c0_i32, %c0_i32_0 : i32, i32
  }
  func.func @transform_3(%arg0: i32) -> (i32, i32) {
    %c0_i32 = arith.constant 0 : i32
    %c0_i32_0 = arith.constant 0 : i32
    %c0_i32_1 = arith.constant 0 : i32
    return %c0_i32, %c0_i32_0 : i32, i32
  }
  func.func @transform_4(%arg0: i32) -> (i32, i32, i32) {
    %c0_i32 = arith.constant 0 : i32
    %c0_i32_0 = arith.constant 0 : i32
    %c0_i32_1 = arith.constant 0 : i32
    return %arg0, %c0_i32, %c0_i32_0 : i32, i32, i32
  }
  func.func @transform_5(%arg0: i32) -> (i32, i32, i32) {
    %c0_i32 = arith.constant 0 : i32
    %c0_i32_0 = arith.constant 0 : i32
    %c0_i32_1 = arith.constant 0 : i32
    return %arg0, %c0_i32, %c0_i32_0 : i32, i32, i32
  }
}

</mosaic_0001>

<bundles_post_ra>
// kernel: tpu_custom_call.1
= control target key start
LH: loop header
LB: loop body
LE: loop exit
PB: predicated region body
PF: predicated region fallthrough
CT: control target
= control target key end

     0   :  { %11 = vsyncpa [#allocation3], 0  ;;  %s968_s0 = inlined_call_operand.vmem [shape: f32[2,4,256], index: 0, kind: input, shape index: {}]   ;;  %s969_s1 = inlined_call_operand.vmem [shape: f32[4,16], index: 1, kind: input, shape index: {}]   ;;  %s970_s2 = inlined_call_operand.vmem [shape: f32[16,4], index: 2, kind: input, shape index: {}]   ;;  %s971_s3 = inlined_call_operand.hbm [shape: f32[16,256], index: 3, kind: input, shape index: {}]   ;;  %s972_s4 = inlined_call_operand.hbm [shape: f32[2,4,256], index: 4, kind: output, shape index: {0}]   ;;  %s973_s5 = inlined_call_operand.hbm [shape: f32[2,1,16], index: 5, kind: output, shape index: {1}]  }
   0x1   :  { %12 = vsyncpa [#allocation4], 0 }
   0x2   :  { %14 = vsyncpa [#allocation4 + $0x1], 0 }
   0x3   :  { %15 = vsyncpa [#allocation7], 0 }
   0x4   :  { %17 = vsyncpa [#allocation7 + $0x1], 0  ;;  %s833_s18 = smov 0   ;;  %s835_s19 = smov 0  }
   0x5   :  { %s837_s20 = smov 0   ;;  %s839_s21 = smov 0  }
   0x6 LB: > { %s854_s22 = sadd.s32 4294967295, %s798_s21   ;;  %s585_s23 = sadd.s32 4294967294, %s798_s21   ;;  %s798_s21 = sphi %s839_s21, %s979_s21   ;;  %s794_s20 = sphi %s837_s20, %s978_s20   ;;  %s790_s19 = sphi %s835_s19, %s977_s19   ;;  %s786_s18 = sphi %s833_s18, %s976_s18  }
   0x7   : > { %s858_s24 = sadd.s32 1, %s798_s21   ;;  %s119_s25 = sadd.s32 1, %s794_s20 }
   0x8   : > { %s116_s26 = ssub.s32 %s798_s21, %s858_s24  ;;  %p129_p0 = scmp.ne.s32.totalorder %s794_s20, %s790_s19 }
   0x9   : > { %p117_p1 = scmp.eq.s32.totalorder %s116_s26, 0  ;;  %p130_p2 = scmp.eq.s32.totalorder %s854_s22, 1 }
   0xa   : > { %p135_p3 = scmp.ne.s32.totalorder %s790_s19, %s786_s18  ;;  %p136_p4 = scmp.eq.s32.totalorder %s585_s23, 1 }
   0xb   : > { %s869_s27 = scalar_select %p117_p1, %s794_s20, %s119_s25  }
   0xc   : > { %p871_p5 = por %p130_p2, %p129_p0  ;;  %p875_p6 = por %p136_p4, %p135_p3 }
   0xd   : > { %p586_p7 = scmp.ge.s32.totalorder %s798_s21, 1  ;;  %p169_p8 = scmp.lt.s32.totalorder %s798_s21, 3 }
   0xe   : > { %p628_p9 = scmp.eq.s32.totalorder %s854_s22, 0  ;;  %s186_s7 = sshll.u32 %s971_s3, 4  ;;  %s187_s7 = int_to_ptr.hbm [resolvable:$true] %s186_s7 }
   0xf   : > { %p170_p10 = pnand %p586_p7, %p169_p8  ;;  %s800_s8 = smov [#allocation2]  }
  0x10   : > { %s188_s9 = sshll.u32 %s800_s8, 4  ;;  %s801_s10 = smov 256   ;;  %s189_s9 = int_to_ptr.vmem [resolvable:$true] %s188_s9 }
  0x11   : > { %p617_p11 = pneg %p170_p10  ;;  %s802_s11 = smov 16  }
  0x12   : > { %212 = sbr.rel (%p170_p10) target bundleno = 616 (0x268), region = 36 }
  0x13   : > { %p618_p12 = pnand %p628_p9, %p617_p11 }
  0x15   : > { %620 = dma.hbm_to_vmem [thread:$0]  (!%p618_p12), %s187_s7, 512, %s189_s9, [#allocation3], %s801_s10, %s801_s10, %s802_s11  }
  0x17   : > { %773 = dma.done.wait (%p628_p9), [#allocation3], 512  }
  0x18   : > { %775 = vsyncadd (%p628_p9), [#allocation3], 4294966784  ;;  %p245_p13 = scmp.lt.s32.totalorder %s854_s22, 1  ;;  %v252_v0 = vld [vmem:[#allocation2 + $0x10] sm:$0xff]  ;;  %v253_v1 = vld [vmem:[#allocation2 + $0x18] sm:$0xff]  ;;  %vm261_vm0 = vcmask 1043456   ;;  %s481_s11 = scalar_lea.hbm %s973_s5, %s854_s22 }
  0x19   : > { %290 = vmatpush.xpose.msra.mxu0 %v252_v0  ;;  %310 = vmatpush.xpose.msra.mxu1 %v253_v1  ;;  %v250_v3 = vld [vmem:[#allocation2] sm:$0xff]  ;;  %v251_v4 = vld [vmem:[#allocation2 + $0x8] sm:$0xff]  ;;  %v317_v21 = vld [vmem:[%s969_s1] sm:$0xf]  ;;  %vm318_vm1 = vcmask 130048   ;;  %vm348_vm2 = vcmask 31744  }
  0x1a   : > { %s246_s12 = scalar_select %p245_p13, %s854_s22, 1  ;;  %594 = vmatpush.xpose.msk.msra.mxu2 %vm318_vm1, %v317_v21  ;;  %v347_v22 = vld [vmem:[%s970_s2 + $0x8] sm:$0xff]  ;;  %v346_v27 = vld [vmem:[%s970_s2] sm:$0xff]  ;;  %vm397_vm6 = vcmask 122880  }
  0x1b   : > { %596 = vmatpush.xpose.msk.msra.mxu3 %vm348_vm2, %v347_v22  ;;  %s913_s7 = sand.u32 1, %s790_s19   ;;  %s720_s25 = scalar_lea.hbm %s973_s5, 2 }
  0x1c   : > { %s607_s13 = sshll.u32 %s246_s12, 3  ;;  %s244_s8 = scalar_lea.vmem [#allocation6], %s913_s7 }
  0x1d   : > { %s249_s16 = scalar_lea.vmem %s968_s0, %s607_s13  ;;  %291 = vmatpush.xpose.msra.mxu0 %v250_v3  ;;  %311 = vmatpush.xpose.msra.mxu1 %v251_v4  ;;  %s483_s12 = sshll.u32 %s244_s8, 4  ;;  %s484_s12 = int_to_ptr.vmem [resolvable:$true] %s483_s12 }
  0x1e   : > { %v896_v2 = vld [vmem:[%s249_s16] sm:$0xff]  ;;  %416 = vmatpush.msrb.mxu2 %v252_v0  ;;  %s485_s13 = sshll.u32 %s481_s11, 4  ;;  %s458_s14 = scalar_lea.sflag [#allocation7], %s913_s7  ;;  %s486_s13 = int_to_ptr.hbm [resolvable:$true] %s485_s13 }
  0x1f   : > { %256 = vst [vmem:[#allocation1] ss:$2 sm:$0xff] %v896_v2  ;;  %597 = vmatpush.xpose.msk.msra.mxu3 %vm348_vm2, %v346_v27  ;;  %s714_s15 = sshra.s32 %s486_s13, 4  ;;  %s715_s15 = int_to_ptr.hbm [resolvable:$true] %s714_s15 }
  0x20   : > { %417 = vmatpush.msrb.mxu2 %v250_v3  ;;  %s716_s16 = scalar_lea.hbm %s715_s15, 1  ;;  %p721_p3 = scmp.lt.s32.totalorder %s715_s15, %s973_s5 }
  0x21   : > { %436 = vmatpush.msrb.mxu0 %v253_v1  ;;  %p717_p0 = scmp.ne.s32.totalorder %s715_s15, %s716_s16  ;;  %p722_p4 = scmp.lt.s32.totalorder %s720_s25, %s716_s16 }
  0x23   : > { %437 = vmatpush.msrb.mxu0 %v251_v4  ;;  %p718_p1 = pnand %p717_p0, %p871_p5  ;;  %p723_p7 = por %p722_p4, %p721_p3 }
  0x25   : > { %p719_p2 = pneg %p718_p1 }
  0x26   : > { %v257_v5 = vld.sshfl [vmem:[#allocation1] sm:$0xff pattern:$0x75316420]  ;;  %v258_v6 = vld.sshfl [vmem:[#allocation1 + $0x8] sm:$0xff pattern:$0x75316420] }
  0x27   : > { %v262_v7 = vsel %vm261_vm0, %v257_v5, 0.0  ;;  %v269_v8 = vsel %vm261_vm0, %v258_v6, 0.0  ;;  %p724_p8 = pnand %p723_p7, %p719_p2 }
  0x28   : > { %v263_v9 = vrot.slane %v262_v7, 4  ;;  %v270_v10 = vrot.slane %v269_v8, 4 }
  0x2a   : > { %v264_v11 = vadd.f32 %v263_v9, %v262_v7  ;;  %v271_v12 = vadd.f32 %v270_v10, %v269_v8 }
  0x2c   : > { %v265_v13 = vrot.slane %v264_v11, 2  ;;  %v272_v14 = vrot.slane %v271_v12, 2 }
  0x2e   : > { %v266_v15 = vadd.f32 %v265_v13, %v264_v11  ;;  %v273_v16 = vadd.f32 %v272_v14, %v271_v12 }
  0x30   : > { %v267_v17 = vrot.slane %v266_v15, 1  ;;  %v274_v18 = vrot.slane %v273_v16, 1 }
  0x32   : > { %v268_v19 = vadd.f32 %v267_v17, %v266_v15  ;;  %v275_v20 = vadd.f32 %v274_v18, %v273_v16 }
  0x34   : > { %292 = vmatmul.f32.vlgmr.msra.gmra.mxu0 %v268_v19  ;;  %312 = vmatmul.f32.vlgmr.msra.gmra.mxu1 %v275_v20 }
  0xb1   : > { %v293_v23 = vpop.f32.mrf.mxu0  ;;  %v313_v24 = vpop.f32.mrf.mxu1 }
  0xb2   : > { %v314_v25 = vadd.f32 %v313_v24, %v293_v23 }
  0xb4   : > { %v316_v26 = vmul.f32 0.015625, %v314_v25 }
  0xb6   : > { %595 = vmatmul.msk.f32.vlgmr.msra.gmra.mxu2 %vm318_vm1, %v316_v26 }
 0x139   : > { %v342_v28 = vpop.f32.mrf.mxu2 }
 0x13a   : > { %v345_v29 = vmax.f32 %v342_v28, 0.0 }
 0x13c   : > { %598 = vmatmul.msk.f32.vlgmr.msra.gmra.mxu3 %vm348_vm2, %v345_v29 }
 0x1bf   : > { %v375_v30 = vpop.f32.mrf.mxu3 }
 0x1c0   : > { %v599_v31 = vmul.f32 -1.442695, %v375_v30 }
 0x1c2   : > { %666 = vpow2.f32 %v599_v31 }
 0x1c8   : > { %v667_v32 = vpop.eup %666 }
 0x1c9   : > { %v381_v33 = vadd.f32 1.0, %v667_v32 }
 0x1cb   : > { %668 = vrcp.f32 %v381_v33  ;;  %v393_v37 = vand.u32 2147483648, %v381_v33  ;;  %v391_v39 = vand.u32 2147483647, %v381_v33  ;;  %vm387_vm4 = vweird.f32 %v381_v33 }
 0x1cd   : > { %v394_v41 = vor.u32 1.1754944e-38, %v393_v37  ;;  %vm392_vm7 = vcmp.eq.f32.partialorder %v391_v39, 8.507059e+37 }
 0x1d1   : > { %v669_v34 = vpop.eup %668 }
 0x1d2   : > { %v383_v35 = vmul.f32 %v669_v34, %v381_v33  ;;  %vm388_vm3 = vweird.f32 %v669_v34 }
 0x1d3   : > { %vm389_vm5 = vmor %vm387_vm4, %vm388_vm3 }
 0x1d4   : > { %v384_v36 = vsub.f32 1.0, %v383_v35 }
 0x1d6   : > { %v385_v38 = vmul.f32 %v669_v34, %v384_v36 }
 0x1d8   : > { %v386_v40 = vadd.f32 %v669_v34, %v385_v38 }
 0x1da   : > { %v390_v42 = vsel %vm389_vm5, %v669_v34, %v386_v40 }
 0x1db   : > { %v395_v43 = vsel %vm392_vm7, %v394_v41, %v390_v42 }
 0x1dc   : > { %600 = vmatmul.msk.f32.vlgmr.msrb.gmra.mxu2 %vm318_vm1, %v395_v43  ;;  %601 = vmatmul.msk.f32.vlgmr.msrb.gmra.mxu0 %vm318_vm1, %v395_v43  ;;  %398 = vst.msk [vmem:[%s244_s8] sm:$0x1] %vm397_vm6, %v395_v43 }
 0x1dd   : > { %727 = shalt.err (!%p724_p8)
}
 0x1de   : > { %614 = dma.vmem_to_hbm [thread:$0]  (%p871_p5), %s484_s12, 16, %s486_s13, %s458_s14  }
 0x1df   : > { %s591_s6 = sshll.u32 %s913_s7, 3  ;;  %s608_s8 = sshll.u32 %s854_s22, 3 }
 0x1e0   : > { %s468_s11 = scalar_lea.hbm %s972_s4, %s608_s8  ;;  %s238_s15 = scalar_lea.vmem [#allocation5], %s591_s6 }
 0x1e1   : > { %s470_s16 = sshll.u32 %s238_s15, 4  ;;  %s472_s17 = sshll.u32 %s468_s11, 4  ;;  %s471_s16 = int_to_ptr.vmem [resolvable:$true] %s470_s16  ;;  %s473_s17 = int_to_ptr.hbm [resolvable:$true] %s472_s17 }
 0x1e2   : > { %s453_s22 = scalar_lea.sflag [#allocation4], %s913_s7  ;;  %s742_s12 = sshra.s32 %s473_s17, 4  ;;  %s743_s12 = int_to_ptr.hbm [resolvable:$true] %s742_s12 }
 0x1e3   : > { %s744_s13 = scalar_lea.hbm %s743_s12, 8  ;;  %s748_s25 = scalar_lea.hbm %s972_s4, 16 }
 0x1e4   : > { %p745_p9 = scmp.ne.s32.totalorder %s743_s12, %s744_s13  ;;  %p749_p12 = scmp.lt.s32.totalorder %s743_s12, %s972_s4 }
 0x1e5   : > { %p750_p13 = scmp.lt.s32.totalorder %s748_s25, %s744_s13 }
 0x1e6   : > { %p746_p10 = pnand %p745_p9, %p871_p5 }
 0x1e7   : > { %p751_p0 = por %p750_p13, %p749_p12 }
 0x1e8   : > { %p747_p11 = pneg %p746_p10 }
 0x1ea   : > { %p752_p1 = pnand %p751_p0, %p747_p11 }
 0x259   : > { %v439_v44 = vpop.f32.mrf.mxu0 }
 0x25a   : > { %v444_v45 = vperm.slane %v439_v44, 0 }
 0x25c   : > { %v447_v47 = vrot.slane %v444_v45, 4 }
 0x25f   : > { %v419_v46 = vpop.f32.mrf.mxu2 }
 0x260   : > { %v443_v48 = vperm.slane %v419_v46, 0 }
 0x262   : > { %v448_v49 = vsel %vm261_vm0, %v443_v48, %v447_v47 }
 0x263   : > { %v450_v50 = vmul.f32 %v448_v49, %v896_v2 }
 0x265   : > { %451 = vst [vmem:[%s238_s15] sm:$0xff] %v450_v50 }
 0x266   : > { %755 = shalt.err (!%p752_p1)
}
 0x267   : > { %613 = dma.vmem_to_hbm [thread:$0]  (%p871_p5), %s471_s16, 128, %s473_s17, %s453_s22  }
 0x268 PF: > { %p630_p2 = scmp.ge.s32.totalorder %s798_s21, 2  ;;  %s497_s7 = sand.u32 1, %s786_s18  }
 0x269   : > { %s498_s6 = scalar_lea.sflag [#allocation4], %s497_s7 }
 0x26a   : > { %p622_p3 = pnand %p630_p2, %p875_p6 }
 0x26c   : > { %p623_p4 = pneg %p622_p3 }
 0x26e   : > { %777 = dma.done.wait (%p623_p4), %s498_s6, 128  }
 0x26f   : > { %779 = vsyncadd (%p623_p4), %s498_s6, 4294967168  ;;  %s508_s8 = scalar_lea.sflag [#allocation7], %s497_s7 }
 0x270   : > { %781 = dma.done.wait (%p623_p4), %s508_s8, 16  }
 0x271   : > { %783 = vsyncadd (%p623_p4), %s508_s8, 4294967280  ;;  %p20_p5 = scmp.ge.s32.totalorder %s858_s24, 4   ;;  %s976_s18 = smov %s790_s19 }
 0x272   : > { %s977_s19 = smov %s794_s20  ;;  %s978_s20 = smov %s869_s27 }
 0x273   : > { %s979_s21 = smov %s858_s24  ;;  %22 = sbr.rel (!%p20_p5) target bundleno = 6 (0x6), region = 93 }
 0x278   :  { %513 = vsyncpa [#allocation3], 1 }
 0x279   :  { %515 = vsyncpa [#allocation3 + $0x1], 1 }
 0x27a   :  { %516 = vsyncpa [#allocation4], 1 }
 0x27b   :  { %518 = vsyncpa [#allocation4 + $0x1], 1 }
 0x27c   :  { %519 = vsyncpa [#allocation7], 1 }
 0x27d   :  { %521 = vsyncpa [#allocation7 + $0x1], 1 }

</bundles_post_ra>
